<compile_context>
chip_gen: v6e
topology: v6e:2x2x1
jax: 0.10.0
libtpu: 0.0.40
codegen_flags: <defaults>
</compile_context>

<pallas_src>
import jax
import jax.numpy as jnp
from jax.experimental import pallas as pl
from jax.experimental.pallas import tpu as pltpu

_NEG_BIG = -1e30  # finite "minus infinity" for padded logit columns (f32-safe)


def _round_up(x, m):
    return (x + m - 1) // m * m


def _pick_block_b(batch):
    """Batch tile: tiny batches -> one sublane-rounded tile; large batches ->
    half the batch (>= 2 grid steps so v7x's two TensorCores split the work),
    capped at 2048 rows to stay inside v5e's scoped-VMEM budget."""
    if batch <= 64:
        return max(8, _round_up(batch, 8))
    return min(2048, _round_up((batch + 1) // 2, 8))


# ---------------------------------------------------------------------------
# Kernel body (shared by the single-actor and stacked multi-agent wrappers).
# All refs are 2-D VMEM tiles; weights/biases use constant block indices so
# they stay resident in VMEM across batch tiles.
# ---------------------------------------------------------------------------
def actor_kernel(obs_ref, w1_ref, b1_ref, w2_ref, b2_ref, w3_ref, b3_ref, out_ref):
    # obs arrives f32; cast to the matmul dtype in-register.
    x = obs_ref[...].astype(w1_ref.dtype)

    # FC1 + relu (MXU accumulates in f32; elementwise math stays f32 -> v5e-safe)
    h1 = jnp.dot(x, w1_ref[...], preferred_element_type=jnp.float32) + b1_ref[...]
    h1 = jnp.maximum(h1, 0.0)

    # FC2 + relu
    h2 = jnp.dot(h1.astype(w2_ref.dtype), w2_ref[...],
                 preferred_element_type=jnp.float32) + b2_ref[...]
    h2 = jnp.maximum(h2, 0.0)

    # FC3 logits over the lane-dense (128-wide) padded action axis.
    logits = jnp.dot(h2.astype(w3_ref.dtype), w3_ref[...],
                     preferred_element_type=jnp.float32) + b3_ref[...]

    # Numerically stable, exact softmax.  Padded action columns carry a -1e30
    # bias, so exp underflows to 0 and the real-action distribution is exact.
    m = jnp.max(logits, axis=-1, keepdims=True)
    e = jnp.exp(logits - m)
    denom = jnp.sum(e, axis=-1, keepdims=True)
    out_ref[...] = (e / denom).astype(out_ref.dtype)


# ---------------------------------------------------------------------------
# One-time parameter preparation (hoisted out of the forward path).
# ---------------------------------------------------------------------------
def prepare_actor_params(params, *, use_bf16=True):
    """Pad + cast Actor weights once; returns ((w1,b1,w2,b2,w3,b3), dim_action)."""
    w1, b1, w2, b2, w3, b3 = params
    b1 = jnp.reshape(b1, (1, -1))
    b2 = jnp.reshape(b2, (1, -1))
    b3 = jnp.reshape(b3, (1, -1))

    h1_dim = w1.shape[1]
    dim_action = w3.shape[1]

    # hidden 500 -> 512 zero pad (exact: relu(0)=0, zero W2 rows add nothing)
    h1_pad = _round_up(h1_dim, 128)
    if h1_pad != h1_dim:
        w1 = jnp.pad(w1, ((0, 0), (0, h1_pad - h1_dim)))
        b1 = jnp.pad(b1, ((0, 0), (0, h1_pad - h1_dim)))
        w2 = jnp.pad(w2, ((0, h1_pad - h1_dim), (0, 0)))

    # action 8 -> 128 pad for a lane-dense output: zero W3 columns plus a
    # -1e30 bias so padded logits contribute zero probability mass.
    a_pad = _round_up(dim_action, 128)
    if a_pad != dim_action:
        w3 = jnp.pad(w3, ((0, 0), (0, a_pad - dim_action)))
        b3 = jnp.pad(b3, ((0, 0), (0, a_pad - dim_action)), constant_values=_NEG_BIG)

    mat_dtype = jnp.bfloat16 if use_bf16 else jnp.float32
    w1 = w1.astype(mat_dtype)
    w2 = w2.astype(mat_dtype)
    w3 = w3.astype(mat_dtype)
    b1 = b1.astype(jnp.float32)
    b2 = b2.astype(jnp.float32)
    b3 = b3.astype(jnp.float32)
    return (w1, b1, w2, b2, w3, b3), dim_action


def stack_actor_params(prepared_list):
    """Stack N prepared agents' params on a leading axis for stacked_actor_forward."""
    dim_action = prepared_list[0][1]
    stacked = tuple(jnp.stack(parts) for parts in zip(*(p[0] for p in prepared_list)))
    return stacked, dim_action


# ---------------------------------------------------------------------------
# Single-actor forward.
# ---------------------------------------------------------------------------
def actor_forward(obs, prepared, *, block_b=None, out_dtype=jnp.float32,
                  core_parallel=False):
    """obs: [B, dim_observation] f32 -> [B, dim_action] softmax probabilities."""
    (w1, b1, w2, b2, w3, b3), dim_action = prepared
    B, d_obs = obs.shape
    a_pad = w3.shape[1]

    if block_b is None:
        block_b = _pick_block_b(B)
    block_b = max(8, _round_up(block_b, 8))
    b_pad = _round_up(B, block_b)
    if b_pad != B:
        obs = jnp.pad(obs, ((0, b_pad - B), (0, 0)))

    grid = (b_pad // block_b,)

    def resident(arr):  # fetched once, resident across all batch tiles
        return pl.BlockSpec(arr.shape, lambda i: (0, 0))

    # core_parallel=True shards grid steps across v7x's two TensorCores.
    batch_sem = pltpu.CORE_PARALLEL if core_parallel else "parallel"

    out = pl.pallas_call(
        actor_kernel,
        out_shape=jax.ShapeDtypeStruct((b_pad, a_pad), out_dtype),
        grid=grid,
        in_specs=[
            pl.BlockSpec((block_b, d_obs), lambda i: (i, 0)),  # pipelined obs tile
            resident(w1), resident(b1),
            resident(w2), resident(b2),
            resident(w3), resident(b3),
        ],
        out_specs=pl.BlockSpec((block_b, a_pad), lambda i: (i, 0)),
        compiler_params=pltpu.CompilerParams(
            dimension_semantics=(batch_sem,),
            vmem_limit_bytes=32 * 1024 * 1024,
        ),
    )(obs, w1, b1, w2, b2, w3, b3)
    return out[:B, :dim_action]


# ---------------------------------------------------------------------------
# Stacked multi-agent forward: all agents in ONE pallas_call.
# ---------------------------------------------------------------------------
def stacked_actor_forward(obs, stacked_prepared, *, block_b=None,
                          out_dtype=jnp.float32):
    """obs: [A, B, dim_observation] f32 -> [A, B, dim_action] softmax probs."""
    (w1, b1, w2, b2, w3, b3), dim_action = stacked_prepared
    A, B, d_obs = obs.shape
    a_pad = w3.shape[-1]

    if block_b is None:
        block_b = _pick_block_b(B)
    block_b = max(8, _round_up(block_b, 8))
    b_pad = _round_up(B, block_b)
    if b_pad != B:
        obs = jnp.pad(obs, ((0, 0), (0, b_pad - B), (0, 0)))

    # Batch axis innermost so each agent's weights stay resident across its tiles.
    grid = (A, b_pad // block_b)

    def resident(arr):  # per-agent weights; agent dim squeezed out of the kernel
        return pl.BlockSpec((None,) + arr.shape[1:], lambda a, i: (a, 0, 0))

    out = pl.pallas_call(
        actor_kernel,
        out_shape=jax.ShapeDtypeStruct((A, b_pad, a_pad), out_dtype),
        grid=grid,
        in_specs=[
            pl.BlockSpec((None, block_b, d_obs), lambda a, i: (a, i, 0)),
            resident(w1), resident(b1),
            resident(w2), resident(b2),
            resident(w3), resident(b3),
        ],
        out_specs=pl.BlockSpec((None, block_b, a_pad), lambda a, i: (a, i, 0)),
        compiler_params=pltpu.CompilerParams(
            dimension_semantics=("parallel", "parallel"),
            vmem_limit_bytes=32 * 1024 * 1024,
        ),
    )(obs, w1, b1, w2, b2, w3, b3)
    return out[:, :B, :dim_action]


# ---------------------------------------------------------------------------
# Init (PyTorch nn.Linear default) and pure-JAX reference.
# ---------------------------------------------------------------------------
def init_actor_params(key, dim_observation, dim_action):
    """PyTorch nn.Linear default init: U(-1/sqrt(fan_in), 1/sqrt(fan_in))."""
    def linear(key, fan_in, fan_out):
        kw, kb = jax.random.split(key)
        bound = 1.0 / jnp.sqrt(fan_in)
        # stored as [in, out] (transposed vs torch's [out, in])
        w = jax.random.uniform(kw, (fan_in, fan_out), jnp.float32, -bound, bound)
        b = jax.random.uniform(kb, (1, fan_out), jnp.float32, -bound, bound)
        return w, b

    k1, k2, k3 = jax.random.split(key, 3)
    w1, b1 = linear(k1, dim_observation, 500)
    w2, b2 = linear(k2, 500, 128)
    w3, b3 = linear(k3, 128, dim_action)
    return (w1, b1, w2, b2, w3, b3)


def actor_reference(obs, params):
    w1, b1, w2, b2, w3, b3 = params
    h1 = jax.nn.relu(obs @ w1 + b1)
    h2 = jax.nn.relu(h1 @ w2 + b2)
    return jax.nn.softmax(h2 @ w3 + b3, axis=-1)


if __name__ == "__main__":
    dim_observation = 32
    dim_action = 8

    key = jax.random.PRNGKey(0)
    k_obs_s, k_obs_b, k_params, k_agents, k_obs_a = jax.random.split(key, 5)
    params = init_actor_params(k_params, dim_observation, dim_action)

    # One-time weight preparation (pad/cast hoisted out of the forward path).
    prep_bf16 = prepare_actor_params(params, use_bf16=True)
    prep_f32 = prepare_actor_params(params, use_bf16=False)

    obs_small = jax.random.normal(k_obs_s, (2, dim_observation), jnp.float32)
    obs_big = jax.random.normal(k_obs_b, (300, dim_observation), jnp.float32)  # multi-tile grid

    for obs in (obs_small, obs_big):
        ref = actor_reference(obs, params)

        # bf16 MXU operands (v6e/v7x fast path; f32 accumulation + f32 softmax)
        out_bf16 = jax.block_until_ready(actor_forward(obs, prep_bf16))
        assert out_bf16.shape == ref.shape
        assert jnp.allclose(jnp.sum(out_bf16, axis=-1), 1.0, atol=1e-3)
        assert jnp.allclose(out_bf16, ref, atol=2e-2, rtol=2e-2)

        # f32 MXU operands (tight tolerance; exact softmax normalization)
        out_f32 = jax.block_until_ready(actor_forward(obs, prep_f32))
        assert out_f32.shape == ref.shape
        assert jnp.allclose(jnp.sum(out_f32, axis=-1), 1.0, atol=1e-4)
        assert jnp.allclose(out_f32, ref, atol=1e-3, rtol=1e-3)

    # --- stacked multi-agent path: 3 actors, one pallas_call ---
    n_agents = 3
    agent_keys = jax.random.split(k_agents, n_agents)
    agent_params = [init_actor_params(k, dim_observation, dim_action)
                    for k in agent_keys]
    stacked_prep = stack_actor_params(
        [prepare_actor_params(p, use_bf16=True) for p in agent_params])
    obs_agents = jax.random.normal(
        k_obs_a, (n_agents, 300, dim_observation), jnp.float32)

    out_all = jax.block_until_ready(stacked_actor_forward(obs_agents, stacked_prep))
    assert out_all.shape == (n_agents, 300, dim_action)
    for a in range(n_agents):
        ref_a = actor_reference(obs_agents[a], agent_params[a])
        assert jnp.allclose(out_all[a], ref_a, atol=2e-2, rtol=2e-2)

    print("KERNEL_OK")
</pallas_src>

<mosaic_0001>
module attributes {stable_mosaic.version = 11 : i64} {
  func.func @actor_kernel(%arg0: i32, %arg1: memref<8x32xf32, #tpu.memory_space<vmem>>, %arg2: memref<32x512xbf16, #tpu.memory_space<vmem>>, %arg3: memref<1x512xf32, #tpu.memory_space<vmem>>, %arg4: memref<512x128xbf16, #tpu.memory_space<vmem>>, %arg5: memref<1x128xf32, #tpu.memory_space<vmem>>, %arg6: memref<128x128xbf16, #tpu.memory_space<vmem>>, %arg7: memref<1x128xf32, #tpu.memory_space<vmem>>, %arg8: memref<8x128xf32, #tpu.memory_space<vmem>>) attributes {dimension_semantics = [#tpu.dimension_semantics<parallel>], iteration_bounds = array<i64: 1>, scalar_prefetch = 0 : i64, scratch_operands = 0 : i64, tpu.core_type = #tpu.core_type<tc>, window_params = [{transform_indices = @transform_0, window_bounds = array<i64: 8, 32>}, {pipeline_mode = #tpu.pipeline_mode<synchronous>, transform_indices = @transform_1, window_bounds = array<i64: 32, 512>}, {pipeline_mode = #tpu.pipeline_mode<synchronous>, transform_indices = @transform_2, window_bounds = array<i64: 1, 512>}, {pipeline_mode = #tpu.pipeline_mode<synchronous>, transform_indices = @transform_3, window_bounds = array<i64: 512, 128>}, {pipeline_mode = #tpu.pipeline_mode<synchronous>, transform_indices = @transform_4, window_bounds = array<i64: 1, 128>}, {pipeline_mode = #tpu.pipeline_mode<synchronous>, transform_indices = @transform_5, window_bounds = array<i64: 128, 128>}, {pipeline_mode = #tpu.pipeline_mode<synchronous>, transform_indices = @transform_6, window_bounds = array<i64: 1, 128>}, {transform_indices = @transform_7, window_bounds = array<i64: 8, 128>}]} {
    %c0 = arith.constant 0 : index
    %c0_0 = arith.constant 0 : index
    %0 = vector.load %arg1[%c0, %c0_0] : memref<8x32xf32, #tpu.memory_space<vmem>>, vector<8x32xf32>
    %1 = arith.truncf %0 : vector<8x32xf32> to vector<8x32xbf16>
    %c0_1 = arith.constant 0 : index
    %c0_2 = arith.constant 0 : index
    %2 = vector.load %arg2[%c0_1, %c0_2] : memref<32x512xbf16, #tpu.memory_space<vmem>>, vector<32x512xbf16>
    %cst = arith.constant dense<0.000000e+00> : vector<8x512xf32>
    %3 = tpu.matmul %1, %2, %cst {dimension_numbers = #tpu.dot_dimension_numbers<[1], [0], [0], [1], [0, 0, 1, 1], [], []>} : vector<8x32xbf16>, vector<32x512xbf16>, vector<8x512xf32> -> vector<8x512xf32>
    %c0_3 = arith.constant 0 : index
    %c0_4 = arith.constant 0 : index
    %4 = vector.load %arg3[%c0_3, %c0_4] : memref<1x512xf32, #tpu.memory_space<vmem>>, vector<1x512xf32>
    %5 = vector.broadcast %4 : vector<1x512xf32> to vector<8x512xf32>
    %6 = arith.addf %3, %5 : vector<8x512xf32>
    %cst_5 = arith.constant 0.000000e+00 : f32
    %7 = vector.broadcast %cst_5 : f32 to vector<8x512xf32>
    %8 = arith.maximumf %6, %7 : vector<8x512xf32>
    %9 = arith.truncf %8 : vector<8x512xf32> to vector<8x512xbf16>
    %c0_6 = arith.constant 0 : index
    %c0_7 = arith.constant 0 : index
    %10 = vector.load %arg4[%c0_6, %c0_7] : memref<512x128xbf16, #tpu.memory_space<vmem>>, vector<512x128xbf16>
    %cst_8 = arith.constant dense<0.000000e+00> : vector<8x128xf32>
    %11 = tpu.matmul %9, %10, %cst_8 {dimension_numbers = #tpu.dot_dimension_numbers<[1], [0], [0], [1], [0, 0, 1, 1], [], []>} : vector<8x512xbf16>, vector<512x128xbf16>, vector<8x128xf32> -> vector<8x128xf32>
    %c0_9 = arith.constant 0 : index
    %c0_10 = arith.constant 0 : index
    %12 = vector.load %arg5[%c0_9, %c0_10] : memref<1x128xf32, #tpu.memory_space<vmem>>, vector<1x128xf32>
    %13 = vector.broadcast %12 : vector<1x128xf32> to vector<8x128xf32>
    %14 = arith.addf %11, %13 : vector<8x128xf32>
    %cst_11 = arith.constant 0.000000e+00 : f32
    %15 = vector.broadcast %cst_11 : f32 to vector<8x128xf32>
    %16 = arith.maximumf %14, %15 : vector<8x128xf32>
    %17 = arith.truncf %16 : vector<8x128xf32> to vector<8x128xbf16>
    %c0_12 = arith.constant 0 : index
    %c0_13 = arith.constant 0 : index
    %18 = vector.load %arg6[%c0_12, %c0_13] : memref<128x128xbf16, #tpu.memory_space<vmem>>, vector<128x128xbf16>
    %cst_14 = arith.constant dense<0.000000e+00> : vector<8x128xf32>
    %19 = tpu.matmul %17, %18, %cst_14 {dimension_numbers = #tpu.dot_dimension_numbers<[1], [0], [0], [1], [0, 0, 1, 1], [], []>} : vector<8x128xbf16>, vector<128x128xbf16>, vector<8x128xf32> -> vector<8x128xf32>
    %c0_15 = arith.constant 0 : index
    %c0_16 = arith.constant 0 : index
    %20 = vector.load %arg7[%c0_15, %c0_16] : memref<1x128xf32, #tpu.memory_space<vmem>>, vector<1x128xf32>
    %21 = vector.broadcast %20 : vector<1x128xf32> to vector<8x128xf32>
    %22 = arith.addf %19, %21 : vector<8x128xf32>
    %cst_17 = arith.constant dense<0xFF800000> : vector<8xf32>
    %23 = vector.multi_reduction <maximumf>, %22, %cst_17 [1] : vector<8x128xf32> to vector<8xf32>
    %24 = vector.shape_cast %23 : vector<8xf32> to vector<8x1xf32>
    %25 = vector.broadcast %24 : vector<8x1xf32> to vector<8x128xf32>
    %26 = arith.subf %22, %25 : vector<8x128xf32>
    %27 = math.exp %26 : vector<8x128xf32>
    %cst_18 = arith.constant dense<0.000000e+00> : vector<8xf32>
    %28 = vector.multi_reduction <add>, %27, %cst_18 [1] : vector<8x128xf32> to vector<8xf32>
    %29 = vector.shape_cast %28 : vector<8xf32> to vector<8x1xf32>
    %30 = vector.broadcast %29 : vector<8x1xf32> to vector<8x128xf32>
    %31 = arith.divf %27, %30 : vector<8x128xf32>
    %c0_19 = arith.constant 0 : index
    %c0_20 = arith.constant 0 : index
    %32 = vector.load %arg8[%c0_19, %c0_20] : memref<8x128xf32, #tpu.memory_space<vmem>>, vector<8x128xf32>
    tpu.vector_store %arg8[%c0_19, %c0_20], %31 {strides = array<i32>} : memref<8x128xf32, #tpu.memory_space<vmem>>, vector<8x128xf32>,
    return
  }
  func.func @transform_0(%arg0: i32) -> (i32, i32) {
    %c0_i32 = arith.constant 0 : i32
    %c0_i32_0 = arith.constant 0 : i32
    return %arg0, %c0_i32 : i32, i32
  }
  func.func @transform_1(%arg0: i32) -> (i32, i32) {
    %c0_i32 = arith.constant 0 : i32
    %c0_i32_0 = arith.constant 0 : i32
    %c0_i32_1 = arith.constant 0 : i32
    return %c0_i32, %c0_i32_0 : i32, i32
  }
  func.func @transform_2(%arg0: i32) -> (i32, i32) {
    %c0_i32 = arith.constant 0 : i32
    %c0_i32_0 = arith.constant 0 : i32
    %c0_i32_1 = arith.constant 0 : i32
    return %c0_i32, %c0_i32_0 : i32, i32
  }
  func.func @transform_3(%arg0: i32) -> (i32, i32) {
    %c0_i32 = arith.constant 0 : i32
    %c0_i32_0 = arith.constant 0 : i32
    %c0_i32_1 = arith.constant 0 : i32
    return %c0_i32, %c0_i32_0 : i32, i32
  }
  func.func @transform_4(%arg0: i32) -> (i32, i32) {
    %c0_i32 = arith.constant 0 : i32
    %c0_i32_0 = arith.constant 0 : i32
    %c0_i32_1 = arith.constant 0 : i32
    return %c0_i32, %c0_i32_0 : i32, i32
  }
  func.func @transform_5(%arg0: i32) -> (i32, i32) {
    %c0_i32 = arith.constant 0 : i32
    %c0_i32_0 = arith.constant 0 : i32
    %c0_i32_1 = arith.constant 0 : i32
    return %c0_i32, %c0_i32_0 : i32, i32
  }
  func.func @transform_6(%arg0: i32) -> (i32, i32) {
    %c0_i32 = arith.constant 0 : i32
    %c0_i32_0 = arith.constant 0 : i32
    %c0_i32_1 = arith.constant 0 : i32
    return %c0_i32, %c0_i32_0 : i32, i32
  }
  func.func @transform_7(%arg0: i32) -> (i32, i32) {
    %c0_i32 = arith.constant 0 : i32
    %c0_i32_0 = arith.constant 0 : i32
    return %arg0, %c0_i32 : i32, i32
  }
}

</mosaic_0001>

<bundles_post_ra>
// kernel: tpu_custom_call.1
= control target key start
LH: loop header
LB: loop body
LE: loop exit
PB: predicated region body
PF: predicated region fallthrough
CT: control target
= control target key end

     0   :  { %12 = vsyncpa [#allocation3], 0  ;;  %s1148_s0 = inlined_call_operand.hbm [shape: f32[8,32], index: 0, kind: input, shape index: {}]   ;;  %s1149_s1 = inlined_call_operand.hbm [shape: bf16[32,512], index: 1, kind: input, shape index: {}]   ;;  %s1150_s2 = inlined_call_operand.hbm [shape: f32[1,512], index: 2, kind: input, shape index: {}]   ;;  %s1151_s3 = inlined_call_operand.hbm [shape: bf16[512,128], index: 3, kind: input, shape index: {}]   ;;  %s1152_s4 = inlined_call_operand.vmem [shape: f32[1,128], index: 4, kind: input, shape index: {}]   ;;  %s1153_s5 = inlined_call_operand.hbm [shape: bf16[128,128], index: 5, kind: input, shape index: {}]   ;;  %s1154_s6 = inlined_call_operand.vmem [shape: f32[1,128], index: 6, kind: input, shape index: {}]   ;;  %s1155_s7 = inlined_call_operand.hbm [shape: f32[8,128], index: 7, kind: output, shape index: {}]  }
   0x1   :  { %13 = vsyncpa [#allocation6], 0 }
   0x2   :  { %14 = vsyncpa [#allocation9], 0 }
   0x3   :  { %15 = vsyncpa [#allocation4], 0  ;;  %s1063_s24 = smov [#allocation5]  }
   0x4   :  { %s31_s25 = sshll.u32 %s1063_s24, 4  ;;  %s32_s25 = int_to_ptr.vmem [resolvable:$true] %s31_s25 }
   0x5   :  { %s943_s26 = scalar_lea.vmem %s32_s25, 1024  ;;  %p948_p1 = scmp.lt.s32.totalorder %s32_s25, %s32_s25 }
   0x6   :  { %p944_p0 = scmp.ne.s32.totalorder %s32_s25, %s943_s26  ;;  %p949_p2 = scmp.lt.s32.totalorder %s943_s26, %s943_s26 }
   0x8   :  { %p950_p3 = por %p949_p2, %p948_p1 }
   0xa   :  { %p951_p4 = pnand %p950_p3, %p944_p0 }
   0xc   :  { %954 = shalt.err (!%p951_p4)
}
   0xd   :  { %s1064_s27 = smov 256   ;;  %s1065_s28 = smov 16  }
   0xe   :  { %37 = dma.hbm_to_vmem [thread:$0]  %s1149_s1, 1024, %s32_s25, [#allocation6], %s1064_s27, %s1064_s27, %s1065_s28  }
   0xf   :  { %s1066_s8 = smov [#allocation8]  }
  0x10   :  { %s53_s9 = sshll.u32 %s1066_s8, 4  ;;  %s54_s9 = int_to_ptr.vmem [resolvable:$true] %s53_s9 }
  0x11   :  { %s963_s10 = scalar_lea.vmem %s54_s9, 4096  ;;  %p968_p6 = scmp.lt.s32.totalorder %s54_s9, %s54_s9 }
  0x12   :  { %p964_p5 = scmp.ne.s32.totalorder %s54_s9, %s963_s10  ;;  %p969_p7 = scmp.lt.s32.totalorder %s963_s10, %s963_s10 }
  0x14   :  { %p970_p8 = por %p969_p7, %p968_p6 }
  0x16   :  { %p971_p9 = pnand %p970_p8, %p964_p5 }
  0x18   :  { %974 = shalt.err (!%p971_p9)
}
  0x19   :  { %s1067_s11 = smov 64   ;;  %s1068_s12 = smov 4  }
  0x1a   :  { %59 = dma.hbm_to_vmem [thread:$0]  %s1151_s3, 4096, %s54_s9, [#allocation9], %s1067_s11, %s1067_s11, %s1068_s12  }
  0x1b   :  { %s1069_s1 = smov [#allocation2]   ;;  %s1070_s16 = smov [#allocation7]  }
  0x1c   :  { %s22_s15 = sshll.u32 %s1069_s1, 4  ;;  %s44_s17 = sshll.u32 %s1070_s16, 4  ;;  %s23_s15 = int_to_ptr.vmem [resolvable:$true] %s22_s15  ;;  %s45_s17 = int_to_ptr.vmem [resolvable:$true] %s44_s17 }
  0x1d   :  { %s983_s18 = scalar_lea.vmem %s23_s15, 128  ;;  %p988_p11 = scmp.lt.s32.totalorder %s23_s15, %s23_s15 }
  0x1e   :  { %p984_p10 = scmp.ne.s32.totalorder %s23_s15, %s983_s18  ;;  %p989_p12 = scmp.lt.s32.totalorder %s983_s18, %s983_s18 }
  0x20   :  { %p990_p13 = por %p989_p12, %p988_p11 }
  0x22   :  { %p991_p0 = pnand %p990_p13, %p984_p10 }
  0x24   :  { %994 = shalt.err (!%p991_p0)
}
  0x25   :  { %25 = dma.hbm_to_vmem [thread:$0]  %s1148_s0, 128, %s23_s15, [#allocation3]  }
  0x26   :  { %s1003_s21 = scalar_lea.vmem %s45_s17, 64  ;;  %p1008_p2 = scmp.lt.s32.totalorder %s45_s17, %s45_s17 }
  0x27   :  { %p1004_p1 = scmp.ne.s32.totalorder %s45_s17, %s1003_s21  ;;  %p1009_p3 = scmp.lt.s32.totalorder %s1003_s21, %s1003_s21 }
  0x29   :  { %p1010_p4 = por %p1009_p3, %p1008_p2 }
  0x2b   :  { %p1011_p5 = pnand %p1010_p4, %p1004_p1 }
  0x2d   :  { %1014 = shalt.err (!%p1011_p5)
}
  0x2e   :  { %47 = dma.hbm_to_vmem [thread:$0]  %s1150_s2, 64, %s45_s17, [#allocation6]  }
  0x2f   :  { %s1071_s23 = smov [#allocation10]  }
  0x30   :  { %s67_s24 = sshll.u32 %s1071_s23, 4  ;;  %s68_s24 = int_to_ptr.vmem [resolvable:$true] %s67_s24 }
  0x31   :  { %s1023_s25 = scalar_lea.vmem %s68_s24, 1024  ;;  %p1028_p7 = scmp.lt.s32.totalorder %s68_s24, %s68_s24 }
  0x32   :  { %p1024_p6 = scmp.ne.s32.totalorder %s68_s24, %s1023_s25  ;;  %p1029_p8 = scmp.lt.s32.totalorder %s1023_s25, %s1023_s25 }
  0x34   :  { %p1030_p9 = por %p1029_p8, %p1028_p7 }
  0x36   :  { %p1031_p10 = pnand %p1030_p9, %p1024_p6 }
  0x38   :  { %1034 = shalt.err (!%p1031_p10)
}
  0x39   :  { %73 = dma.hbm_to_vmem [thread:$0]  %s1153_s5, 1024, %s68_s24, [#allocation9], %s1067_s11, %s1067_s11, %s1068_s12  }
  0x3a   :  { %1055 = dma.done.wait [#allocation3], 128  }
  0x3b   :  { %1056 = vsyncadd [#allocation3], 4294967168 }
  0x3c   :  { %1057 = dma.done.wait [#allocation6], 1088  }
  0x3d   :  { %1058 = vsyncadd [#allocation6], 4294966208 }
  0x3e   :  { %1059 = dma.done.wait [#allocation9], 5120  }
  0x3f   :  { %1060 = vsyncadd [#allocation9], 4294962176  ;;  %v1072_v0 = vmov 0   ;;  %v879_v1 = vld [vmem:[#allocation5 + $0x24] ss:$16 sps:$4 sm:$0xff]   ;;  %v92_v5 = vld [vmem:[#allocation2] sm:$0xff]  ;;  %v104_v44 = vlaneseq }
  0x40   :  { %200 = vmatprep.mubr.bf16.mxu1 %v1072_v0  ;;  %v881_v2 = vld [vmem:[#allocation5 + $0x20] ss:$16 sps:$4 sm:$0xff]   ;;  %180 = vmatprep.subr.bf16.mxu1 %v879_v1  ;;  %v882_v3 = vld [vmem:[#allocation5 + $0x4] ss:$16 sps:$4 sm:$0xff]   ;;  %v887_v6 = vld [vmem:[#allocation5 + $0x2c] ss:$16 sps:$4 sm:$0xff]   ;;  %v93_v8 = vpack.c.bf16 %v92_v5, %v92_v5 }
  0x41   :  { %v884_v4 = vld [vmem:[#allocation5] ss:$16 sps:$4 sm:$0xff]   ;;  %181 = vmatpush1.bf16.msra.mxu1 %v881_v2  ;;  %v885_v7 = vld [vmem:[#allocation5 + $0x28] ss:$16 sps:$4 sm:$0xff]   ;;  %v890_v9 = vld [vmem:[#allocation5 + $0xc] ss:$16 sps:$4 sm:$0xff]  }
  0x42   :  { %182 = vmatprep.subr.bf16.mxu1 %v882_v3  ;;  %v891_v10 = vld [vmem:[#allocation8 + $0x78] sm:$0xff]   ;;  %vm164_vm0 = vcmask 261120   ;;  %v893_v12 = vld [vmem:[#allocation8 + $0x70] sm:$0xff]   ;;  %v895_v14 = vld [vmem:[#allocation8 + $0x68] sm:$0xff]   ;;  %v1073_v43 = vmov 0.0   ;;  %v105_v45 = vshrl.u32 %v104_v44, 7 }
  0x43   :  { %v892_v11 = vld [vmem:[#allocation8 + $0x38] sm:$0xff]   ;;  %793 = vmatprep.subr.bf16.mxu0 %v891_v10  ;;  %v894_v13 = vld [vmem:[#allocation8 + $0x30] sm:$0xff]   ;;  %v897_v17 = vld [vmem:[#allocation8 + $0x28] sm:$0xff]   ;;  %vm1074_vm1 = vmmov 0  }
  0x44   :  { %794 = vmatpush3.bf16.msra.mxu0 %v892_v11  ;;  %v888_v15 = vld [vmem:[#allocation5 + $0x8] ss:$16 sps:$4 sm:$0xff]   ;;  %v896_v16 = vld [vmem:[#allocation8 + $0xf8] sm:$0xff]   ;;  %v904_v24 = vld [vmem:[#allocation8 + $0xe8] sm:$0xff]   ;;  %v106_v46 = vsub.s32 0, %v105_v45  ;;  %v110_v48 = vsub.s32 1, %v105_v45 }
  0x45   :  { %183 = vmatpush1.bf16.msra.mxu1 %v884_v4  ;;  %795 = vmatprep.subr.bf16.mxu0 %v893_v12  ;;  %v899_v18 = vld [vmem:[#allocation8 + $0x60] sm:$0xff]   ;;  %v898_v19 = vld [vmem:[#allocation8 + $0xb8] sm:$0xff]   ;;  %v900_v20 = vld [vmem:[#allocation8 + $0xf0] sm:$0xff]   ;;  %v114_v53 = vsub.s32 2, %v105_v45  ;;  %v118_v56 = vsub.s32 3, %v105_v45 }
  0x46   :  { %221 = vmatprep.subr.bf16.mxu1 %v887_v6  ;;  %v901_v21 = vld [vmem:[#allocation8 + $0x20] sm:$0xff]   ;;  %v903_v22 = vld [vmem:[#allocation8 + $0x58] sm:$0xff]   ;;  %v902_v23 = vld [vmem:[#allocation8 + $0xb0] sm:$0xff]  }
  0x47   :  { %v905_v25 = vld [vmem:[#allocation8 + $0x18] sm:$0xff]   ;;  %v907_v26 = vld [vmem:[#allocation8 + $0x50] sm:$0xff]   ;;  %v906_v27 = vld [vmem:[#allocation8 + $0xa8] sm:$0xff]  }
  0x48   :  { %749 = vmatmul.mubr.msk.bf16.vlgmr.msra.gmra.mxu1 %vm164_vm0, %v93_v8  ;;  %796 = vmatpush3.bf16.msra.mxu0 %v894_v13  ;;  %v908_v28 = vld [vmem:[#allocation8 + $0xe0] sm:$0xff]   ;;  %v909_v29 = vld [vmem:[#allocation8 + $0x10] sm:$0xff]   ;;  %v911_v31 = vld [vmem:[#allocation8 + $0x48] sm:$0xff]  }
  0x49   :  { %222 = vmatpush1.bf16.msra.mxu1 %v885_v7  ;;  %241 = vmatprep.mubr.bf16.mxu1 %v1072_v0  ;;  %v910_v30 = vld [vmem:[#allocation8 + $0xa0] sm:$0xff]   ;;  %v912_v32 = vld [vmem:[#allocation8 + $0xd8] sm:$0xff]   ;;  %v913_v33 = vld [vmem:[#allocation8 + $0x8] sm:$0xff]  }
  0x4a   :  { %223 = vmatprep.subr.bf16.mxu1 %v890_v9  ;;  %797 = vmatprep.subr.bf16.mxu0 %v895_v14  ;;  %v914_v34 = vld [vmem:[#allocation8 + $0x98] sm:$0xff]   ;;  %v915_v35 = vld [vmem:[#allocation8 + $0x40] sm:$0xff]   ;;  %v916_v36 = vld [vmem:[#allocation8 + $0xd0] sm:$0xff]  }
  0x4b   :  { %v917_v37 = vld [vmem:[#allocation8] sm:$0xff]   ;;  %v918_v38 = vld [vmem:[#allocation8 + $0x90] sm:$0xff]   ;;  %v919_v39 = vld [vmem:[#allocation8 + $0xc8] sm:$0xff]  }
  0x4c   :  { %798 = vmatpush3.bf16.msra.mxu0 %v897_v17  ;;  %v920_v40 = vld [vmem:[#allocation8 + $0x88] sm:$0xff]   ;;  %v921_v41 = vld [vmem:[#allocation8 + $0xc0] sm:$0xff]   ;;  %v102_v47 = vld [vmem:[#allocation7] sm:$0xf] }
  0x4d   :  { %224 = vmatpush1.bf16.msra.mxu1 %v888_v15  ;;  %799 = vmatprep.subr.bf16.mxu0 %v899_v18  ;;  %v922_v42 = vld [vmem:[#allocation8 + $0x80] sm:$0xff]   ;;  %v107_v49 = vrot.slane %v102_v47, %v106_v46  ;;  %v111_v50 = vrot.slane %v102_v47, %v110_v48  ;;  %v115_v59 = vrot.slane %v102_v47, %v114_v53  ;;  %v923_v0 = vld [vmem:[#allocation10 + $0x38] sm:$0xff]   ;;  %v924_v6 = vld [vmem:[#allocation10 + $0x30] sm:$0xff]  }
  0x4e   :  { %815 = vmatprep.subr.bf16.mxu1 %v896_v16  ;;  %v119_v63 = vrot.slane %v102_v47, %v118_v56  ;;  %v925_v12 = vld [vmem:[#allocation10 + $0x28] sm:$0xff]   ;;  %v926_v14 = vld [vmem:[#allocation10 + $0x20] sm:$0xff]   ;;  %v927_v15 = vld [vmem:[#allocation10 + $0x18] sm:$0xff]  }
  0x4f   :  { %v928_v16 = vld [vmem:[#allocation10 + $0x10] sm:$0xff]   ;;  %v929_v17 = vld [vmem:[#allocation10 + $0x8] sm:$0xff]   ;;  %v930_v18 = vld [vmem:[#allocation10] sm:$0xff]  }
  0x50   :  { %750 = vmatmul.mubr.msk.bf16.vlgmr.msra.gmra.mxu1 %vm164_vm0, %v93_v8  ;;  %800 = vmatpush3.bf16.msra.mxu0 %v901_v21 }
  0x51   :  { %816 = vmatpush3.bf16.msra.mxu1 %v898_v19  ;;  %801 = vmatprep.subr.bf16.mxu0 %v903_v22 }
  0x52   :  { %817 = vmatprep.subr.bf16.mxu1 %v900_v20 }
  0x54   :  { %802 = vmatpush3.bf16.msra.mxu0 %v905_v25 }
  0x55   :  { %818 = vmatpush3.bf16.msra.mxu1 %v902_v23  ;;  %803 = vmatprep.subr.bf16.mxu0 %v907_v26 }
  0x56   :  { %819 = vmatprep.subr.bf16.mxu1 %v904_v24  ;;  %v751_v24 = vld [vmem:[%s1152_s4] ss:$0 sm:$0xff]  ;;  %s1075_s4 = smov [#allocation11]  }
  0x57   :  { %s730_s29 = sshll.u32 %s1075_s4, 4  ;;  %s731_s29 = int_to_ptr.vmem [resolvable:$true] %s730_s29 }
  0x58   :  { %804 = vmatpush3.bf16.msra.mxu0 %v909_v29  ;;  %p1040_p12 = scmp.lt.s32.totalorder %s731_s29, %s731_s29 }
  0x59   :  { %820 = vmatpush3.bf16.msra.mxu1 %v906_v27  ;;  %805 = vmatprep.subr.bf16.mxu0 %v911_v31 }
  0x5a   :  { %821 = vmatprep.subr.bf16.mxu1 %v908_v28 }
  0x5c   :  { %806 = vmatpush3.bf16.msra.mxu0 %v913_v33 }
  0x5d   :  { %822 = vmatpush3.bf16.msra.mxu1 %v910_v30  ;;  %807 = vmatprep.subr.bf16.mxu0 %v915_v35 }
  0x5e   :  { %823 = vmatprep.subr.bf16.mxu1 %v912_v32 }
  0x60   :  { %808 = vmatpush3.bf16.msra.mxu0 %v917_v37 }
  0x61   :  { %824 = vmatpush3.bf16.msra.mxu1 %v914_v34  ;;  %846 = vmatprep.subr.bf16.mxu0 %v1073_v43  ;;  %v784_v34 = vld [vmem:[%s1154_s6] ss:$0 sm:$0xff]  ;;  %s1035_s6 = scalar_lea.vmem %s731_s29, 128 }
  0x62   :  { %825 = vmatprep.subr.bf16.mxu1 %v916_v36  ;;  %p1036_p11 = scmp.ne.s32.totalorder %s731_s29, %s1035_s6  ;;  %p1041_p13 = scmp.lt.s32.totalorder %s1035_s6, %s1035_s6 }
  0x64   :  { %p1042_p0 = por %p1041_p13, %p1040_p12 }
  0x65   :  { %826 = vmatpush3.bf16.msra.mxu1 %v918_v38 }
  0x66   :  { %827 = vmatprep.subr.bf16.mxu1 %v919_v39  ;;  %p1043_p1 = pnand %p1042_p0, %p1036_p11 }
  0x69   :  { %828 = vmatpush3.bf16.msra.mxu1 %v920_v40 }
  0x6a   :  { %829 = vmatprep.subr.bf16.mxu1 %v921_v41 }
  0x6d   :  { %830 = vmatpush3.bf16.msra.mxu1 %v922_v42 }
 0x108   :  { %v202_v51 = vpop.f32.mrf.mxu1 }
 0x109   :  { %v203_v52 = vadd.f32 %v202_v51, %v107_v49 }
 0x10a   :  { %v204_v54 = vpop.f32.mrf.mxu1 }
 0x10b   :  { %v205_v55 = vadd.f32 %v204_v54, %v111_v50  ;;  %v250_v57 = vmax.f32 %v203_v52, 0.0 }
 0x10c   :  { %v206_v58 = vpop.f32.mrf.mxu1 }
 0x10d   :  { %v251_v60 = vmax.f32 %v205_v55, 0.0  ;;  %v254_v1 = vpack.c.bf16 %v250_v57, %v250_v57 }
 0x10e   :  { %v207_v61 = vpop.f32.mrf.mxu1 }
 0x10f   :  { %v255_v62 = vpack.c.bf16 %v251_v60, %v251_v60 }
 0x110   :  { %v243_v2 = vpop.f32.mrf.mxu1 }
 0x111   :  { %v244_v3 = vadd.f32 %v243_v2, %v115_v59  ;;  %553 = vmatprep.mubr.bf16.mxu0 %v255_v62 }
 0x112   :  { %v245_v4 = vpop.f32.mrf.mxu1  ;;  %554 = vmatmul.mubr.bf16.vlgmr.msra.gmra.mxu0 %v254_v1 }
 0x113   :  { %v246_v5 = vadd.f32 %v245_v4, %v119_v63  ;;  %847 = vmatpush3.bf16.msra.mxu0 %v923_v0  ;;  %v252_v7 = vmax.f32 %v244_v3, 0.0  ;;  %862 = vmatprep.mubr.msk.bf16.mxu0 %vm1074_vm1, %v1073_v43 }
 0x114   :  { %v247_v8 = vpop.f32.mrf.mxu1  ;;  %848 = vmatprep.subr.bf16.mxu0 %v1073_v43 }
 0x115   :  { %v253_v9 = vmax.f32 %v246_v5, 0.0  ;;  %v256_v13 = vpack.c.bf16 %v252_v7, %v252_v7 }
 0x116   :  { %v248_v10 = vpop.f32.mrf.mxu1 }
 0x117   :  { %v257_v11 = vpack.c.bf16 %v253_v9, %v253_v9  ;;  %849 = vmatpush3.bf16.msra.mxu0 %v924_v6 }
 0x118   :  { %850 = vmatprep.subr.bf16.mxu0 %v1073_v43 }
 0x119   :  { %593 = vmatprep.mubr.bf16.mxu1 %v257_v11 }
 0x11a   :  { %594 = vmatmul.mubr.bf16.vlgmr.msra.gmra.mxu1 %v256_v13 }
 0x11b   :  { %851 = vmatpush3.bf16.msra.mxu0 %v925_v12 }
 0x11c   :  { %852 = vmatprep.subr.bf16.mxu0 %v1073_v43 }
 0x11f   :  { %853 = vmatpush3.bf16.msra.mxu0 %v926_v14 }
 0x120   :  { %854 = vmatprep.subr.bf16.mxu0 %v1073_v43 }
 0x123   :  { %855 = vmatpush3.bf16.msra.mxu0 %v927_v15 }
 0x124   :  { %856 = vmatprep.subr.bf16.mxu0 %v1073_v43 }
 0x127   :  { %857 = vmatpush3.bf16.msra.mxu0 %v928_v16 }
 0x128   :  { %858 = vmatprep.subr.bf16.mxu0 %v1073_v43 }
 0x12b   :  { %859 = vmatpush3.bf16.msra.mxu0 %v929_v17 }
 0x12c   :  { %860 = vmatprep.subr.bf16.mxu0 %v1073_v43 }
 0x12f   :  { %861 = vmatpush3.bf16.msra.mxu0 %v930_v18 }
 0x1d2   :  { %v809_v19 = vpop.f32.mrf.mxu0 }
 0x1d4   :  { %v810_v20 = vpop.f32.mrf.mxu0 }
 0x1d5   :  { %v811_v23 = vadd.f32 %v810_v20, %v809_v19 }
 0x1d6   :  { %v812_v21 = vpop.f32.mrf.mxu0 }
 0x1d7   :  { %v556_v27 = vadd.f32 %v811_v23, %v751_v24 }
 0x1d8   :  { %v813_v22 = vpop.f32.mrf.mxu0 }
 0x1da   :  { %v831_v25 = vpop.f32.mrf.mxu1 }
 0x1dc   :  { %v832_v26 = vpop.f32.mrf.mxu1 }
 0x1dd   :  { %v833_v28 = vadd.f32 %v832_v26, %v831_v25 }
 0x1de   :  { %v834_v29 = vpop.f32.mrf.mxu1 }
 0x1df   :  { %v596_v30 = vadd.f32 %v833_v28, %v556_v27 }
 0x1e0   :  { %v835_v31 = vpop.f32.mrf.mxu1 }
 0x1e1   :  { %v601_v32 = vmax.f32 %v596_v30, 0.0 }
 0x1e3   :  { %v602_v33 = vpack.c.bf16 %v601_v32, %v601_v32 }
 0x1e5   :  { %863 = vmatmul.mubr.bf16.vlgmr.msra.gmra.mxu0 %v602_v33 }
 0x2a5   :  { %v708_v35 = vpop.f32.mrf.mxu0 }
 0x2a6   :  { %v709_v36 = vadd.f32 %v784_v34, %v708_v35 }
 0x2a7   :  { %v864_v37 = vpop.f32.mrf.mxu0 }
 0x2a8   :  { %714 = vmax.xlane.f32.xlu0 %v709_v36 }
 0x2a9   :  { %v711_v38 = vpop.f32.mrf.mxu0 }
 0x2ab   :  { %v865_v39 = vpop.f32.mrf.mxu0 }
 0x331   :  { %v715_v40 = vpop.xlane.xlu0 %714 }
 0x332   :  { %v716_v41 = vsub.f32 %v709_v36, %v715_v40 }
 0x334   :  { %v717_v42 = vmul.f32 1.442695, %v716_v41 }
 0x336   :  { %931 = vpow2.f32 %v717_v42 }
 0x343   :  { %v932_v43 = vpop.eup %931 }
 0x344   :  { %719 = vadd.xlane.f32.xlu0 %v932_v43 }
 0x3cd   :  { %v720_v44 = vpop.xlane.xlu0 %719 }
 0x3ce   :  { %933 = vrcp.f32 %v720_v44 }
 0x3db   :  { %v934_v45 = vpop.eup %933 }
 0x3dc   :  { %v722_v46 = vmul.f32 %v934_v45, %v932_v43 }
 0x3de   :  { %723 = vst [vmem:[#allocation11] sm:$0xff] %v722_v46 }
 0x3df   :  { %1046 = shalt.err (!%p1043_p1)
}
 0x3e0   :  { %733 = dma.vmem_to_hbm [thread:$0]  %s731_s29, 128, %s1155_s7, [#allocation4]  }
 0x3e1   :  { %1061 = dma.done.wait [#allocation4], 128  }
 0x3e2   :  { %1062 = vsyncadd [#allocation4], 4294967168 }
 0x3e3   :  { %737 = vsyncpa [#allocation3], 1 }
 0x3e4   :  { %738 = vsyncpa [#allocation6], 1 }
 0x3e5   :  { %739 = vsyncpa [#allocation9], 1 }
 0x3e6   :  { %740 = vsyncpa [#allocation4], 1 }

</bundles_post_ra>
